<compile_context>
chip_gen: v5e
topology: v5e:2x2
jax: 0.10.0
libtpu: 0.0.40
codegen_flags: <defaults>
</compile_context>

<pallas_src>
import numpy as np
import jax
import jax.numpy as jnp
from jax.experimental import pallas as pl
from jax.experimental.pallas import tpu as pltpu


# ---------------------------------------------------------------------------
# Geometry / buffers (mirrors torch __init__ exactly; pure numpy, static).
# ---------------------------------------------------------------------------
def make_geometry(kernel_size, out_channels, in_channels):
    r = (kernel_size - 1) // 2
    xs = np.arange(-r, r + 1, dtype=np.float32)
    X = np.stack(np.meshgrid(xs, xs, indexing='ij'), -1)             # (k,k,2)
    R = np.sqrt((X ** 2).sum(-1))                                    # (k,k)
    rs, inds = np.unique(R, return_inverse=True)
    inds = inds.reshape(R.shape)
    indsxxx = inds.astype(np.int64) - 1
    indsxxx[indsxxx == -1] = 0                                       # (k,k)
    identity = np.eye(2, dtype=np.float32)[:, :, None, None]         # (2,2,1,1)
    Xhat = np.zeros_like(X)
    nz = R > 0
    Xhat[nz] = X[nz] / R[nz][..., None]
    Xhat = np.transpose(Xhat, (2, 0, 1))                             # (2,k,k)
    XXX = Xhat[:, None, None] * Xhat[None, :, None] * Xhat[None, None, :]
    XDD = Xhat[:, None, None] * identity[None, :, :]
    DXD = Xhat[None, :, None] * identity[:, None, :]
    DDX = identity[:, :, None] * Xhat[None, None, :]

    def tile(b):  # torch Tensor.repeat == np.tile
        return np.tile(b.reshape(4, 2, kernel_size, kernel_size),
                       (out_channels, in_channels, 1, 1)).astype(np.float32)

    bufs = dict(XXX=tile(XXX), XDD=tile(XDD), DXD=tile(DXD), DDX=tile(DDX))
    return bufs, indsxxx.astype(np.int32), len(rs)


def init_params(key, in_channels, out_channels, n_rs):
    keys = jax.random.split(key, 4)
    scale = 1.0 / np.sqrt(3 * in_channels * 2)
    shape = (out_channels, in_channels, n_rs - 1)
    names = ('xxx', 'xdd', 'dxd', 'ddx')
    return {n: scale * jax.random.normal(k, shape, jnp.float32)
            for n, k in zip(names, keys)}


def build_filter(params, bufs, indsxxx):
    """c[4*O, 2*I, k, k] — same algebra as the torch forward.

    jnp.repeat == torch.repeat_interleave (element-wise interleave), matching
    the torch forward exactly; the buffers were built with Tensor.repeat
    (= np.tile) in __init__, matching make_geometry above.
    """
    def term(w, buf):
        ww = jnp.repeat(jnp.repeat(w, 2, axis=1), 4, axis=0)         # (4O,2I,nrs-1)
        return ww[..., indsxxx] * buf                                # (4O,2I,k,k)
    return (term(params['xxx'], bufs['XXX']) + term(params['ddx'], bufs['DDX'])
            + term(params['dxd'], bufs['DXD']) + term(params['xdd'], bufs['XDD']))


# ---------------------------------------------------------------------------
# Pallas kernel: conv as one folded-K matmul per pixel tile (lane-dense out).
# ---------------------------------------------------------------------------
def _patch_matmul_kernel(w_ref, p_ref, o_ref):
    # w_ref: (Cout, K) resident weights; p_ref: (K, tile) patch tile;
    # o_ref: (Cout, tile) lane-dense output tile.
    o_ref[...] = jnp.dot(w_ref[...], p_ref[...],
                         preferred_element_type=jnp.float32).astype(o_ref.dtype)


def conv_via_pallas(patches_t, w_t, *, tm=1024):
    """patches_t: (K, M), w_t: (Cout, K) -> (Cout, M) f32."""
    K, M = patches_t.shape
    Cout, Kw = w_t.shape
    assert Kw == K
    # Lane tile: multiple of 128, capped at tm; prefer >= 2 tiles so the grid
    # can shard across TensorCores (v7x megacore). VMEM use stays tiny.
    m128 = ((M + 127) // 128) * 128
    tile = min(tm, m128)
    if m128 // tile < 2 and m128 >= 256:
        tile = max(128, ((m128 // 2) // 128) * 128)
    m_pad = ((M + tile - 1) // tile) * tile
    if m_pad != M:
        # Zero pixel columns -> zero output columns, sliced off below.
        patches_t = jnp.pad(patches_t, ((0, 0), (0, m_pad - M)))

    out = pl.pallas_call(
        _patch_matmul_kernel,
        out_shape=jax.ShapeDtypeStruct((Cout, m_pad), jnp.float32),
        grid_spec=pltpu.PrefetchScalarGridSpec(
            num_scalar_prefetch=0,
            grid=(m_pad // tile,),
            in_specs=[
                # Weights: full-array block, constant index -> DMA'd once,
                # held in VMEM across the whole grid.
                pl.BlockSpec((Cout, K), lambda i: (0, 0)),
                # Patches: pixel axis on lanes, full K on sublanes.
                pl.BlockSpec((K, tile), lambda i: (0, i)),
            ],
            out_specs=pl.BlockSpec((Cout, tile), lambda i: (0, i)),
        ),
        compiler_params=pltpu.CompilerParams(
            dimension_semantics=("parallel",)),
    )(w_t, patches_t)
    return out[:, :M]


# ---------------------------------------------------------------------------
# Forward: pad -> folded im2col (glue) -> Pallas matmul -> NCHW output.
# ---------------------------------------------------------------------------
_PAD_MODE = {'zeros': 'constant', 'constant': 'constant', 'circular': 'wrap',
             'reflect': 'reflect', 'replicate': 'edge'}


def vector_to_matrix_forward(x, params, bufs, indsxxx, kernel_size, padding,
                             padding_mode='zeros'):
    # x: (N, 2*in_channels, H, W)  NCHW, like the PyTorch module.
    c = build_filter(params, bufs, indsxxx)                          # (4O,2I,k,k)
    Cout, Cin, k, _ = c.shape
    N, Cx, H, W = x.shape
    assert Cx == Cin, "input must have 2*in_channels channels"
    xp = jnp.pad(x, ((0, 0), (0, 0), (padding, padding), (padding, padding)),
                 mode=_PAD_MODE[padding_mode])
    Ho = H + 2 * padding - k + 1
    Wo = W + 2 * padding - k + 1
    M = N * Ho * Wo

    # Folded im2col: K index = (kh*k + kw)*Cin + cin, pixel index = (n, y, x).
    taps = [jnp.transpose(xp[:, :, kh:kh + Ho, kw:kw + Wo],
                          (1, 0, 2, 3)).reshape(Cin, M)
            for kh in range(k) for kw in range(k)]
    patches_t = jnp.concatenate(taps, axis=0)                        # (k*k*Cin, M)

    # Weight with the same K ordering: c (Cout,Cin,kh,kw) -> (Cout, kh*kw*Cin).
    w_t = jnp.transpose(c, (0, 2, 3, 1)).reshape(Cout, k * k * Cin)  # (Cout, K)

    out_t = conv_via_pallas(patches_t, w_t)                          # (Cout, M)
    return out_t.reshape(Cout, N, Ho, Wo).transpose(1, 0, 2, 3)      # NCHW


if __name__ == "__main__":
    in_channels, out_channels, kernel_size, padding = 2, 4, 3, 1
    N, H, W = 2, 16, 16

    bufs_np, indsxxx, n_rs = make_geometry(kernel_size, out_channels, in_channels)
    bufs = {k_: jnp.asarray(v) for k_, v in bufs_np.items()}

    key = jax.random.PRNGKey(0)
    kp, kx = jax.random.split(key)
    params = init_params(kp, in_channels, out_channels, n_rs)
    x = jax.random.normal(kx, (N, 2 * in_channels, H, W), jnp.float32)

    out = vector_to_matrix_forward(x, params, bufs, indsxxx, kernel_size, padding)
    out = jax.block_until_ready(out)

    Ho = H + 2 * padding - kernel_size + 1
    Wo = W + 2 * padding - kernel_size + 1
    assert out.shape == (N, 4 * out_channels, Ho, Wo), out.shape

    # Cross-check against XLA conv (same semantics as torch.nn.functional.conv2d).
    c = build_filter(params, bufs, indsxxx)
    ref = jax.lax.conv_general_dilated(
        x, c, window_strides=(1, 1), padding=[(padding, padding)] * 2,
        dimension_numbers=('NCHW', 'OIHW', 'NCHW'),
        precision=jax.lax.Precision.HIGHEST)
    assert bool(jnp.allclose(out, ref, atol=1e-3, rtol=1e-3)), \
        float(jnp.max(jnp.abs(out - ref)))

    print("KERNEL_OK")
</pallas_src>

<mosaic_0001>
module attributes {stable_mosaic.version = 11 : i64} {
  func.func @_patch_matmul_kernel(%arg0: i32, %arg1: memref<16x36xf32, #tpu.memory_space<vmem>>, %arg2: memref<36x256xf32, #tpu.memory_space<vmem>>, %arg3: memref<16x256xf32, #tpu.memory_space<vmem>>) attributes {dimension_semantics = [#tpu.dimension_semantics<parallel>], iteration_bounds = array<i64: 2>, scalar_prefetch = 0 : i64, scratch_operands = 0 : i64, tpu.core_type = #tpu.core_type<tc>, window_params = [{pipeline_mode = #tpu.pipeline_mode<synchronous>, transform_indices = @transform_0, window_bounds = array<i64: 16, 36>}, {transform_indices = @transform_1, window_bounds = array<i64: 36, 256>}, {transform_indices = @transform_2, window_bounds = array<i64: 16, 256>}]} {
    %c0 = arith.constant 0 : index
    %c0_0 = arith.constant 0 : index
    %0 = vector.load %arg1[%c0, %c0_0] : memref<16x36xf32, #tpu.memory_space<vmem>>, vector<16x36xf32>
    %c0_1 = arith.constant 0 : index
    %c0_2 = arith.constant 0 : index
    %1 = vector.load %arg2[%c0_1, %c0_2] : memref<36x256xf32, #tpu.memory_space<vmem>>, vector<36x256xf32>
    %cst = arith.constant dense<0.000000e+00> : vector<16x256xf32>
    %2 = tpu.matmul %0, %1, %cst {dimension_numbers = #tpu.dot_dimension_numbers<[1], [0], [0], [1], [0, 0, 1, 1], [], []>} : vector<16x36xf32>, vector<36x256xf32>, vector<16x256xf32> -> vector<16x256xf32>
    %c0_3 = arith.constant 0 : index
    %c0_4 = arith.constant 0 : index
    %3 = vector.load %arg3[%c0_3, %c0_4] : memref<16x256xf32, #tpu.memory_space<vmem>>, vector<16x256xf32>
    tpu.vector_store %arg3[%c0_3, %c0_4], %2 {strides = array<i32>} : memref<16x256xf32, #tpu.memory_space<vmem>>, vector<16x256xf32>,
    return
  }
  func.func @transform_0(%arg0: i32) -> (i32, i32) {
    %c0_i32 = arith.constant 0 : i32
    %c0_i32_0 = arith.constant 0 : i32
    %c0_i32_1 = arith.constant 0 : i32
    return %c0_i32, %c0_i32_0 : i32, i32
  }
  func.func @transform_1(%arg0: i32) -> (i32, i32) {
    %c0_i32 = arith.constant 0 : i32
    %c0_i32_0 = arith.constant 0 : i32
    return %c0_i32, %arg0 : i32, i32
  }
  func.func @transform_2(%arg0: i32) -> (i32, i32) {
    %c0_i32 = arith.constant 0 : i32
    %c0_i32_0 = arith.constant 0 : i32
    return %c0_i32, %arg0 : i32, i32
  }
}

</mosaic_0001>

<bundles_post_ra>
// kernel: tpu_custom_call.1
= control target key start
LH: loop header
LB: loop body
LE: loop exit
PB: predicated region body
PF: predicated region fallthrough
CT: control target
= control target key end

     0   :  { %7 = vsyncpa [#allocation3], 0  ;;  %s754_s0 = inlined_call_operand.hbm [shape: f32[16,36], index: 0, kind: input, shape index: {}]   ;;  %s755_s1 = inlined_call_operand.hbm [shape: f32[36,512], index: 1, kind: input, shape index: {}]   ;;  %s756_s2 = inlined_call_operand.hbm [shape: f32[16,512], index: 2, kind: output, shape index: {}]  }
   0x1   :  { %8 = vsyncpa [#allocation6], 0 }
   0x2   :  { %10 = vsyncpa [#allocation6 + $0x1], 0 }
   0x3   :  { %11 = vsyncpa [#allocation4], 0 }
   0x4   :  { %13 = vsyncpa [#allocation4 + $0x1], 0  ;;  %s615_s9 = smov 0   ;;  %s617_s10 = smov 0  }
   0x5   :  { %s619_s11 = smov 0   ;;  %s621_s12 = smov 0  }
   0x6 LB: > { %s636_s13 = sadd.s32 4294967295, %s589_s12   ;;  %s360_s14 = sadd.s32 4294967294, %s589_s12   ;;  %s589_s12 = sphi %s621_s12, %s766_s12   ;;  %s585_s11 = sphi %s619_s11, %s765_s11   ;;  %s581_s10 = sphi %s617_s10, %s764_s10   ;;  %s577_s9 = sphi %s615_s9, %s763_s9  }
   0x7   : > { %p60_p0 = scmp.ne.s32.totalorder %s581_s10, %s577_s9  ;;  %p61_p1 = scmp.eq.s32.totalorder %s636_s13, 0 }
   0x8   : > { %p84_p2 = scmp.eq.s32.totalorder %s636_s13, 1  ;;  %p90_p3 = scmp.eq.s32.totalorder %s360_s14, 1 }
   0x9   : > { %p645_p4 = por %p61_p1, %p60_p0  ;;  %p361_p5 = scmp.ge.s32.totalorder %s589_s12, 1 }
   0xa   : > { %p650_p6 = por %p90_p3, %p60_p0  ;;  %p97_p7 = scmp.lt.s32.totalorder %s589_s12, 3 }
   0xb   : > { %s108_s19 = sshll.u32 %s754_s0, 4  ;;  %s591_s21 = smov [#allocation2]   ;;  %s109_s19 = int_to_ptr.hbm [resolvable:$true] %s108_s19 }
   0xc   : > { %p658_p8 = pnand %p361_p5, %p97_p7  ;;  %s110_s22 = sshll.u32 %s591_s21, 4  ;;  %s111_s22 = int_to_ptr.vmem [resolvable:$true] %s110_s22 }
   0xd   : > { %s668_s23 = sadd.s32 1, %s589_s12   ;;  %s592_s24 = smov 128  }
   0xe   : > { %p402_p9 = pneg %p658_p8  ;;  %s593_s25 = smov 8  }
   0xf   : > { %s44_s26 = ssub.s32 %s589_s12, %s668_s23  ;;  %s47_s27 = sadd.s32 1, %s585_s11 }
  0x10   : > { %p403_p10 = pnand %p402_p9, %p61_p1  ;;  %p45_p12 = scmp.eq.s32.totalorder %s44_s26, 0 }
  0x11   : > { %p54_p13 = scmp.ne.s32.totalorder %s585_s11, %s581_s10  ;;  %p55_p0 = scmp.eq.s32.totalorder %s589_s12, 0 }
  0x12   : > { %405 = dma.hbm_to_vmem [thread:$0]  (!%p403_p10), %s109_s19, 256, %s111_s22, [#allocation3], %s592_s24, %s592_s24, %s593_s25  }
  0x13   : > { %p415_p3 = scmp.lt.s32.totalorder %s589_s12, 2  ;;  %p56_p5 = por %p55_p0, %p54_p13 }
  0x14   : > { %s678_s28 = scalar_select %p45_p12, %s585_s11, %s47_s27  }
  0x15   : > { %p682_p7 = por %p84_p2, %p54_p13  ;;  %s124_s30 = sand.u32 1, %s585_s11  }
  0x16   : > { %s380_s3 = sshll.u32 %s589_s12, 4  ;;  %s392_s4 = smul.u32 80, %s124_s30 }
  0x17   : > { %s133_s7 = scalar_lea.hbm %s755_s1, %s380_s3  ;;  %p691_p9 = pnand %p415_p3, %p56_p5 }
  0x18   : > { %s134_s14 = sshll.u32 %s133_s7, 4  ;;  %s128_s17 = scalar_lea.vmem [#allocation5], %s392_s4  ;;  %s135_s14 = int_to_ptr.hbm [resolvable:$true] %s134_s14 }
  0x19   : > { %s136_s18 = sshll.u32 %s128_s17, 4  ;;  %s125_s19 = scalar_lea.sflag [#allocation6], %s124_s30  ;;  %s137_s18 = int_to_ptr.vmem [resolvable:$true] %s136_s18 }
  0x1a   : > { %s489_s21 = sshra.s32 %s135_s14, 4  ;;  %p493_p10 = pneg %p691_p9  ;;  %s490_s21 = int_to_ptr.hbm [resolvable:$true] %s489_s21 }
  0x1b   : > { %s491_s22 = scalar_lea.hbm %s490_s21, 80  ;;  %s496_s26 = scalar_lea.hbm %s755_s1, 160 }
  0x1c   : > { %p492_p2 = scmp.ne.s32.totalorder %s490_s21, %s491_s22  ;;  %p497_p0 = scmp.lt.s32.totalorder %s490_s21, %s755_s1 }
  0x1d   : > { %p498_p3 = scmp.lt.s32.totalorder %s496_s26, %s491_s22 }
  0x1e   : > { %p494_p12 = pnand %p493_p10, %p492_p2 }
  0x1f   : > { %p499_p5 = por %p498_p3, %p497_p0 }
  0x20   : > { %p495_p13 = pneg %p494_p12 }
  0x22   : > { %p500_p11 = pnand %p499_p5, %p495_p13 }
  0x24   : > { %503 = shalt.err (!%p500_p11)
}
  0x25   : > { %s594_s30 = smov 512   ;;  %s595_s4 = smov 256  }
  0x26   : > { %s596_s5 = smov 16   ;;  %148 = sbr.rel (%p658_p8) target bundleno = 197 (0xc5), region = 28 }
  0x27   : > { %409 = dma.hbm_to_vmem [thread:$0]  (!%p691_p9), %s135_s14, 1280, %s137_s18, %s125_s19, %s594_s30, %s595_s4, %s596_s5  }
  0x2b   : > { %564 = dma.done.wait (%p61_p1), [#allocation3], 256  }
  0x2c   : > { %566 = vsyncadd (%p61_p1), [#allocation3], 4294967040  ;;  %s712_s6 = sand.u32 1, %s581_s10  }
  0x2d   : > { %s393_s7 = smul.u32 80, %s712_s6  ;;  %s156_s17 = scalar_lea.sflag [#allocation6], %s712_s6 }
  0x2f   : > { %s159_s21 = scalar_lea.vmem [#allocation5], %s393_s7 }
  0x30   : > { %568 = dma.done.wait (%p645_p4), %s156_s17, 1280  }
  0x31   : > { %570 = vsyncadd (%p645_p4), %s156_s17, 4294966016  ;;  %vm202_vm0 = vcmask 1043456   ;;  %v193_v0 = vld [vmem:[%s159_s21 + $0x40] sm:$0xf]  ;;  %v194_v1 = vld [vmem:[%s159_s21 + $0x48] sm:$0xf] }
  0x32   : > { %v191_v2 = vld [vmem:[%s159_s21 + $0x30] sm:$0xff]  ;;  %382 = vmatpush.msk.msra.mxu2 %vm202_vm0, %v193_v0  ;;  %387 = vmatpush.msk.msra.mxu3 %vm202_vm0, %v194_v1  ;;  %v192_v3 = vld [vmem:[%s159_s21 + $0x38] sm:$0xff]  ;;  %v189_v4 = vld [vmem:[%s159_s21 + $0x20] sm:$0xff]  ;;  %vm195_vm1 = vcmask 293888   ;;  %s368_s15 = sshll.u32 %s712_s6, 5  ;;  %s381_s20 = sshll.u32 %s636_s13, 4 }
  0x33   : > { %v190_v5 = vld [vmem:[%s159_s21 + $0x28] sm:$0xff]  ;;  %369 = vmatpush.msk.msra.mxu0 %vm202_vm0, %v193_v0  ;;  %372 = vmatpush.msk.msra.mxu1 %vm202_vm0, %v194_v1  ;;  %v187_v6 = vld [vmem:[%s159_s21 + $0x10] sm:$0xff]  ;;  %v188_v7 = vld [vmem:[%s159_s21 + $0x18] sm:$0xff]  ;;  %s271_s18 = scalar_lea.hbm %s756_s2, %s381_s20  ;;  %s180_s19 = scalar_lea.vmem [#allocation7], %s368_s15 }
  0x34   : > { %383 = vmatpush.msra.mxu2 %v191_v2  ;;  %388 = vmatpush.msra.mxu3 %v192_v3  ;;  %v185_v8 = vld [vmem:[%s159_s21] sm:$0xff]  ;;  %v186_v9 = vld [vmem:[%s159_s21 + $0x8] sm:$0xff]  ;;  %s272_s22 = sshll.u32 %s180_s19, 4  ;;  %s274_s24 = sshll.u32 %s271_s18, 4  ;;  %s273_s22 = int_to_ptr.vmem [resolvable:$true] %s272_s22  ;;  %s275_s24 = int_to_ptr.hbm [resolvable:$true] %s274_s24 }
  0x35   : > { %221 = vmatpush.msra.mxu0 %v191_v2  ;;  %244 = vmatpush.msra.mxu1 %v192_v3  ;;  %v184_v10 = vld [vmem:[#allocation2 + $0x8] sm:$0xff]  ;;  %v183_v11 = vld [vmem:[#allocation2] sm:$0xff]  ;;  %s260_s25 = scalar_lea.sflag [#allocation4], %s712_s6  ;;  %s533_s13 = sshra.s32 %s275_s24, 4  ;;  %s534_s13 = int_to_ptr.hbm [resolvable:$true] %s533_s13 }
  0x36   : > { %384 = vmatpush.msra.mxu2 %v189_v4  ;;  %389 = vmatpush.msra.mxu3 %v190_v5  ;;  %s535_s26 = scalar_lea.hbm %s534_s13, 32  ;;  %s539_s30 = scalar_lea.hbm %s756_s2, 64 }
  0x37   : > { %222 = vmatpush.msra.mxu0 %v189_v4  ;;  %245 = vmatpush.msra.mxu1 %v190_v5  ;;  %p536_p1 = scmp.ne.s32.totalorder %s534_s13, %s535_s26  ;;  %p540_p11 = scmp.lt.s32.totalorder %s534_s13, %s756_s2 }
  0x38   : > { %385 = vmatpush.msra.mxu2 %v187_v6  ;;  %390 = vmatpush.msra.mxu3 %v188_v7  ;;  %p541_p9 = scmp.lt.s32.totalorder %s539_s30, %s535_s26 }
  0x39   : > { %223 = vmatpush.msra.mxu0 %v187_v6  ;;  %246 = vmatpush.msra.mxu1 %v188_v7  ;;  %p537_p4 = pnand %p536_p1, %p682_p7 }
  0x3a   : > { %386 = vmatpush.msra.mxu2 %v185_v8  ;;  %391 = vmatpush.msra.mxu3 %v186_v9  ;;  %p542_p2 = por %p541_p9, %p540_p11 }
  0x3b   : > { %371 = vmatmul.msk.f32.vlgmr.msra.gmra.mxu2 %vm195_vm1, %v184_v10  ;;  %374 = vmatmul.msk.f32.vlgmr.msra.gmra.mxu3 %vm195_vm1, %v184_v10  ;;  %p538_p8 = pneg %p537_p4 }
  0x3c   : > { %224 = vmatpush.msra.mxu0 %v185_v8  ;;  %247 = vmatpush.msra.mxu1 %v186_v9 }
  0x3d   : > { %370 = vmatmul.msk.f32.vlgmr.msra.gmra.mxu0 %vm195_vm1, %v183_v11  ;;  %373 = vmatmul.msk.f32.vlgmr.msra.gmra.mxu1 %vm195_vm1, %v183_v11  ;;  %p543_p10 = pnand %p542_p2, %p538_p8 }
  0xba   : > { %v226_v12 = vpop.f32.mrf.mxu0  ;;  %v249_v13 = vpop.f32.mrf.mxu1 }
  0xbb   : > { %255 = vst [vmem:[%s180_s19] sm:$0xff] %v226_v12 }
  0xbc   : > { %256 = vst [vmem:[%s180_s19 + $0x8] sm:$0xff] %v249_v13 }
  0xbe   : > { %v229_v14 = vpop.f32.mrf.mxu2  ;;  %v252_v15 = vpop.f32.mrf.mxu3 }
  0xbf   : > { %257 = vst [vmem:[%s180_s19 + $0x10] sm:$0xff] %v229_v14 }
  0xc0   : > { %258 = vst [vmem:[%s180_s19 + $0x18] sm:$0xff] %v252_v15 }
  0xc1   : > { %546 = shalt.err (!%p543_p10)
}
  0xc2   : > { %s597_s6 = smov 256   ;;  %s598_s7 = smov 512  }
  0xc3   : > { %s599_s17 = smov 16  }
  0xc4   : > { %400 = dma.vmem_to_hbm [thread:$0]  (%p682_p7), %s273_s22, 512, %s275_s24, %s260_s25, %s597_s6, %s598_s7, %s599_s17  }
  0xc5 PF: > { %s289_s21 = sand.u32 1, %s577_s9   ;;  %p762_p12 = scmp.ge.s32.totalorder %s589_s12, 2 }
  0xc6   : > { %s290_s15 = scalar_lea.sflag [#allocation4], %s289_s21 }
  0xc7   : > { %p411_p13 = pnand %p762_p12, %p650_p6 }
  0xc9   : > { %p412_p0 = pneg %p411_p13 }
  0xcb   : > { %572 = dma.done.wait (%p412_p0), %s290_s15, 512  }
  0xcc   : > { %574 = vsyncadd (%p412_p0), %s290_s15, 4294966784  ;;  %p16_p3 = scmp.ge.s32.totalorder %s668_s23, 4   ;;  %s763_s9 = smov %s581_s10 }
  0xcd   : > { %s764_s10 = smov %s585_s11  ;;  %s765_s11 = smov %s678_s28 }
  0xce   : > { %s766_s12 = smov %s668_s23  ;;  %18 = sbr.rel (!%p16_p3) target bundleno = 6 (0x6), region = 78 }
  0xd3   :  { %296 = vsyncpa [#allocation3], 1 }
  0xd4   :  { %298 = vsyncpa [#allocation3 + $0x1], 1 }
  0xd5   :  { %299 = vsyncpa [#allocation6], 1 }
  0xd6   :  { %301 = vsyncpa [#allocation6 + $0x1], 1 }
  0xd7   :  { %302 = vsyncpa [#allocation4], 1 }
  0xd8   :  { %304 = vsyncpa [#allocation4 + $0x1], 1 }

</bundles_post_ra>
